<compile_context>
chip_gen: v7x
topology: tpu7x:2x2x1
jax: 0.10.0
libtpu: 0.0.40
codegen_flags: <defaults>
</compile_context>

<pallas_src>
import jax
import jax.numpy as jnp
import numpy as np
from jax.experimental import pallas as pl
from jax.experimental.pallas import tpu as pltpu


def make_optical_flow_regression(wx, bx, wy, by, H, W, C, pool_size=4):
    """Builds a jitted forward(x) for fixed weights (PyTorch OpticalFlowRegression)."""
    wx = np.asarray(wx, np.float32)
    wy = np.asarray(wy, np.float32)
    bx = np.asarray(bx, np.float32)
    by = np.asarray(by, np.float32)

    HW = H * W
    Hp = (H - pool_size) // pool_size + 1
    Wp = (W - pool_size) // pool_size + 1

    def _make_mask(w):
        # mean over output rows of the Linear (-> per-input-feature weight),
        # reshaped onto the pooled grid with the 1/(pool_size^2) average-pool
        # factor folded in, then up-sampled back to pixel space.  Tail
        # rows/cols outside the floor pooling windows get weight 0 (matches
        # AvgPool2d default: floor mode, no padding).
        wbar = w.mean(axis=0).reshape(Hp, Wp) / float(pool_size * pool_size)
        m = np.zeros((H, W), np.float32)
        m[:Hp * pool_size, :Wp * pool_size] = np.kron(
            wbar, np.ones((pool_size, pool_size), np.float32))
        return m.reshape(HW)

    # Single combined mask, laid out to match the flattened [B, C*H*W] input:
    # lanes [0, HW) multiply channel 0 (flow_x), lanes [HW, 2*HW) channel 1.
    mask = jnp.asarray(
        np.concatenate([_make_mask(wx), _make_mask(wy)]).reshape(1, 2 * HW))
    bbar_x = float(bx.mean())                 # compile-time scalar constants
    bbar_y = float(by.mean())

    # NOTE: the lane slices below ([:, 0:HW], [:, HW:2*HW]) are unmasked /
    # aligned because H*W = 256 is a multiple of 128; they remain correct
    # (just slower, masked loads) if H/W ever change to a non-multiple.
    def _flow_kernel(x_ref, m_ref, o_ref):
        # x_ref: [B, C*H*W] lane-dense; m_ref: [1, 2*H*W]; o_ref: [B, 1]
        prod = x_ref[:, 0:2 * HW] * m_ref[...]           # one VPU pass
        vx = jnp.sum(prod[:, 0:HW], axis=-1, keepdims=True) + bbar_x
        vy = jnp.sum(prod[:, HW:2 * HW], axis=-1, keepdims=True) + bbar_y
        o_ref[...] = jnp.sqrt(vx * vx + vy * vy)         # EUP sqrt, single store

    vmem = pl.BlockSpec(memory_space=pltpu.MemorySpace.VMEM)

    @jax.jit
    def forward(x):
        # x: [B, C, H, W] float32 (C >= 2). Returns [B, 1] float32.
        B = x.shape[0]
        # Free contiguous reshape; channel selection happens inside the kernel.
        x_flat = x.reshape(B, C * H * W).astype(jnp.float32)
        # Gridless: the whole problem is a few KiB of VMEM; a grid step would
        # cost more (~0.35 us) than the entire kernel.  Scaling notes:
        #   * If B grows past a few thousand rows, add a 1-D batch grid
        #     (block ~512-2048 rows, index_map lambda b: (b, 0)) with
        #     dimension_semantics=("parallel",) for megacore / pipelining,
        #     and make the output lane-dense ([1, B] or [cdiv(B,128), 128]).
        #   * VMEM ceilings differ per generation: ~16 MiB default scoped on
        #     v5e, ~32 MiB on v6e/v7x (64 MiB physical on v7x) -- raise
        #     vmem_limit_bytes via pltpu.CompilerParams or tile earlier.
        return pl.pallas_call(
            _flow_kernel,
            out_shape=jax.ShapeDtypeStruct((B, 1), jnp.float32),
            in_specs=[vmem, vmem],
            out_specs=vmem,
        )(x_flat, mask)

    return forward


def _reference(x, wx, bx, wy, by, pool_size=4):
    # Straightforward pool -> linear -> mean -> sqrt (mirrors the PyTorch module).
    B, C, H, W = x.shape
    Hp = (H - pool_size) // pool_size + 1
    Wp = (W - pool_size) // pool_size + 1

    def pool2d(a):
        a = a[:, :Hp * pool_size, :Wp * pool_size]
        return a.reshape(B, Hp, pool_size, Wp, pool_size).mean(axis=(2, 4))

    px = pool2d(x[:, 0]).reshape(B, -1)
    py = pool2d(x[:, 1]).reshape(B, -1)
    lx = px @ wx.T + bx
    ly = py @ wy.T + by
    vx = lx.mean(axis=1, keepdims=True)
    vy = ly.mean(axis=1, keepdims=True)
    return jnp.sqrt(vx ** 2 + vy ** 2)


if __name__ == "__main__":
    key = jax.random.PRNGKey(0)
    B, C, H, W = 2, 4, 16, 16
    pool_size = 4
    Hp = (H - pool_size) // pool_size + 1
    Wp = (W - pool_size) // pool_size + 1
    F = Hp * Wp

    kx, kwx, kbx, kwy, kby = jax.random.split(key, 5)
    x = jax.random.normal(kx, (B, C, H, W), dtype=jnp.float32)
    bound = 1.0 / float(np.sqrt(F))          # torch nn.Linear default init range
    wx = jax.random.uniform(kwx, (F, F), jnp.float32, -bound, bound)
    bx = jax.random.uniform(kbx, (F,), jnp.float32, -bound, bound)
    wy = jax.random.uniform(kwy, (F, F), jnp.float32, -bound, bound)
    by = jax.random.uniform(kby, (F,), jnp.float32, -bound, bound)

    forward = make_optical_flow_regression(wx, bx, wy, by, H, W, C, pool_size)
    out = jax.block_until_ready(forward(x))

    ref = _reference(x, wx, bx, wy, by, pool_size)
    assert out.shape == (B, 1)
    np.testing.assert_allclose(np.asarray(out), np.asarray(ref),
                               rtol=1e-5, atol=1e-5)
    print("KERNEL_OK")
</pallas_src>

<mosaic_0001>
module attributes {stable_mosaic.version = 11 : i64} {
  func.func @_flow_kernel(%arg0: memref<2x1024xf32, #tpu.memory_space<vmem>>, %arg1: memref<1x512xf32, #tpu.memory_space<vmem>>, %arg2: memref<2x1xf32, #tpu.memory_space<vmem>>) attributes {dimension_semantics = [], scalar_prefetch = 0 : i64, scratch_operands = 0 : i64, tpu.core_type = #tpu.core_type<tc>} {
    %c0 = arith.constant 0 : index
    %c0_0 = arith.constant 0 : index
    %0 = vector.load %arg0[%c0, %c0_0] : memref<2x1024xf32, #tpu.memory_space<vmem>>, vector<2x512xf32>
    %c0_1 = arith.constant 0 : index
    %c0_2 = arith.constant 0 : index
    %1 = vector.load %arg1[%c0_1, %c0_2] : memref<1x512xf32, #tpu.memory_space<vmem>>, vector<1x512xf32>
    %2 = vector.broadcast %1 : vector<1x512xf32> to vector<2x512xf32>
    %3 = arith.mulf %0, %2 : vector<2x512xf32>
    %4 = vector.extract_strided_slice %3 {offsets = [0, 0], sizes = [2, 256], strides = [1, 1]} : vector<2x512xf32> to vector<2x256xf32>
    %cst = arith.constant dense<0.000000e+00> : vector<2xf32>
    %5 = vector.multi_reduction <add>, %4, %cst [1] : vector<2x256xf32> to vector<2xf32>
    %6 = vector.shape_cast %5 : vector<2xf32> to vector<2x1xf32>
    %cst_3 = arith.constant 0.0142053552 : f32
    %7 = vector.broadcast %cst_3 : f32 to vector<2x1xf32>
    %8 = arith.addf %6, %7 : vector<2x1xf32>
    %9 = vector.extract_strided_slice %3 {offsets = [0, 256], sizes = [2, 256], strides = [1, 1]} : vector<2x512xf32> to vector<2x256xf32>
    %cst_4 = arith.constant dense<0.000000e+00> : vector<2xf32>
    %10 = vector.multi_reduction <add>, %9, %cst_4 [1] : vector<2x256xf32> to vector<2xf32>
    %11 = vector.shape_cast %10 : vector<2xf32> to vector<2x1xf32>
    %cst_5 = arith.constant -0.0286182612 : f32
    %12 = vector.broadcast %cst_5 : f32 to vector<2x1xf32>
    %13 = arith.addf %11, %12 : vector<2x1xf32>
    %14 = arith.mulf %8, %8 : vector<2x1xf32>
    %15 = arith.mulf %13, %13 : vector<2x1xf32>
    %16 = arith.addf %14, %15 : vector<2x1xf32>
    %17 = math.sqrt %16 : vector<2x1xf32>
    %c0_6 = arith.constant 0 : index
    %c0_7 = arith.constant 0 : index
    %18 = vector.load %arg2[%c0_6, %c0_7] : memref<2x1xf32, #tpu.memory_space<vmem>>, vector<2x1xf32>
    tpu.vector_store %arg2[%c0_6, %c0_7], %17 {strides = array<i32>} : memref<2x1xf32, #tpu.memory_space<vmem>>, vector<2x1xf32>,
    return
  }
}

</mosaic_0001>

<bundles_post_ra>
// kernel: forward.1
= control target key start
LH: loop header
LB: loop body
LE: loop exit
PB: predicated region body
PF: predicated region fallthrough
CT: control target
= control target key end

     0   :  { %v14_v0 = vlaneseq  ;;  %v103_v1 = vmov 1983009808   ;;  %vm60_vm0 = vcmask 1041408   ;;  %vm94_vm1 = vcmask 1024   ;;  %s128_s1 = inlined_call_operand.vmem [shape: f32[1,512], index: 1, kind: input, shape index: {}]   ;;  %s129_s0 = inlined_call_operand.vmem [shape: f32[2,1024], index: 0, kind: input, shape index: {}]   ;;  %s130_s2 = inlined_call_operand.vmem [shape: f32[2,1], index: 2, kind: output, shape index: {}]  }
   0x1   :  { %v33_v2 = vunpack.c.l.s4 %v103_v1  ;;  %v12_v4 = vld [vmem:[%s128_s1] sm:$0xf] }
   0x2   :  { %v15_v3 = vshrl.u32 %v14_v0, 7  ;;  %v11_v19 = vld [vmem:[%s129_s0] sm:$0xff] }
   0x3   :  { %v34_v5 = vunpack.c.0.s8 %v33_v2 }
   0x4   :  { %v16_v6 = vsub.s32 0, %v15_v3  ;;  %v20_v7 = vsub.s32 1, %v15_v3  ;;  %v24_v8 = vsub.s32 2, %v15_v3  ;;  %v28_v9 = vsub.s32 3, %v15_v3 }
   0x5   :  { %v37_v10 = vsub.s32 %v34_v5, %v15_v3 }
   0x6   :  { %v17_v11 = vrot.slane %v12_v4, %v16_v6  ;;  %v21_v12 = vrot.slane %v12_v4, %v20_v7  ;;  %v25_v13 = vrot.slane %v12_v4, %v24_v8  ;;  %v29_v14 = vrot.slane %v12_v4, %v28_v9 }
   0x8   :  { %v30_v15 = vcombine.low %v17_v11, %v21_v12  ;;  %v31_v16 = vcombine.low %v25_v13, %v29_v14 }
   0xa   :  { %v38_v17 = vrot.slane %v30_v15, %v37_v10  ;;  %v45_v18 = vrot.slane %v31_v16, %v37_v10 }
   0xc   :  { %v46_v20 = vcombine.low %v38_v17, %v45_v18 }
   0xe   :  { %v48_v21 = vmul.f32 %v46_v20, %v11_v19 }
  0x10   :  { %v56_v22 = vrot.slane %v48_v21, %v37_v10  ;;  %v67_v23 = vcombine.high %v48_v21, %v48_v21 }
  0x12   :  { %v57_v24 = vcombine.high %v56_v22, %v56_v22  ;;  %v61_v25 = vsel %vm60_vm0, %v56_v22, 0.0  ;;  %v74_v26 = vrot.slane %v67_v23, %v37_v10 }
  0x14   :  { %v62_v27 = vsel %vm60_vm0, %v57_v24, 0.0  ;;  %v75_v28 = vcombine.high %v74_v26, %v74_v26  ;;  %v78_v29 = vsel %vm60_vm0, %v74_v26, 0.0 }
  0x15   :  { %v63_v30 = vadd.f32 %v62_v27, %v61_v25 }
  0x16   :  { %v79_v31 = vsel %vm60_vm0, %v75_v28, 0.0 }
  0x17   :  { %64 = vadd.xlane.f32.xlu0 %v63_v30  ;;  %v80_v32 = vadd.f32 %v79_v31, %v78_v29 }
  0x1b   :  { %81 = vadd.xlane.f32.xlu0 %v80_v32 }
  0xa4   :  { %v65_v33 = vpop.xlane.xlu0 %64 }
  0xa5   :  { %v66_v34 = vadd.f32 0.014205355, %v65_v33 }
  0xa7   :  { %v84_v37 = vmul.f32 %v66_v34, %v66_v34 }
  0xa8   :  { %v82_v35 = vpop.xlane.xlu0 %81 }
  0xa9   :  { %v83_v36 = vadd.f32 -0.028618261, %v82_v35 }
  0xab   :  { %v85_v38 = vmul.f32 %v83_v36, %v83_v36 }
  0xad   :  { %v86_v39 = vadd.f32 %v85_v38, %v84_v37 }
  0xaf   :  { %101 = vrsqrt.f32 %v86_v39  ;;  %vm89_vm2 = vcmp.eq.f32.partialorder %v86_v39, inf  ;;  %v92_v42 = vand.u32 2147483648, %v86_v39  ;;  %vm91_vm3 = vcmp.eq.f32.partialorder %v86_v39, 0.0 }
  0xb9   :  { %v102_v40 = vpop.eup %101 }
  0xba   :  { %v88_v41 = vmul.f32 %v102_v40, %v86_v39 }
  0xbc   :  { %v90_v43 = vsel %vm89_vm2, %v86_v39, %v88_v41 }
  0xbd   :  { %v93_v44 = vsel %vm91_vm3, %v92_v42, %v90_v43 }
  0xbe   :  { %95 = vst.msk [vmem:[%s130_s2] sm:$0x3] %vm94_vm1, %v93_v44 }

</bundles_post_ra>
